<compile_context>
chip_gen: v7x
topology: tpu7x:2x2x1
jax: 0.10.0
libtpu: 0.0.40
codegen_flags: <defaults>
</compile_context>

<pallas_src>
import functools

import jax
import jax.numpy as jnp
from jax.experimental import pallas as pl
from jax.experimental.pallas import tpu as pltpu


def _round_up(a: int, m: int) -> int:
    return ((a + m - 1) // m) * m


# ---------------------------------------------------------------------------
# Pallas kernel: per row-tile computes
#   z        = x @ [W_0^T | ... | W_{T-1}^T | p_hat^T] + [b_0 | ... | b_{T-1} | 0]
#   cos_t    = z[:, T*D + t] * rsqrt(|x|^2 + eps)            (p_hat is unit-norm)
#   sims     = softmax over t of cos
#   out      = sum_t sims_t * z[:, t*D:(t+1)*D] + x          (residual add)
# and also emits sims (needed later by the y-path / inverse_transform).
# ---------------------------------------------------------------------------
def _make_x_kernel(num_trans: int, d: int):
    td = num_trans * d

    def kernel(x_ref, w_ref, b_ref, out_ref, sims_ref):
        x = x_ref[...]                                    # (TN, D)      f32
        w = w_ref[...]                                    # (D, T*D+T)   f32
        b = b_ref[...]                                    # (1, T*D+T)   f32

        # one lane-dense MXU pass: T linear transforms + p projections
        z = jnp.dot(x, w, preferred_element_type=jnp.float32) + b   # (TN, T*D+T)

        # cosine similarities (p pre-normalized; bias is zero on those columns)
        inv_xn = jax.lax.rsqrt(jnp.sum(x * x, axis=-1, keepdims=True) + 1e-12)
        cos = z[:, td:] * inv_xn                          # (TN, T)

        # softmax over the transform axis
        m = jnp.max(cos, axis=-1, keepdims=True)
        e = jnp.exp(cos - m)
        denom = jnp.sum(e, axis=-1, keepdims=True)
        sims = e * pl.reciprocal(denom, approx=True)      # (TN, T)

        # weighted sum of the T transforms + residual (static unrolled VPU loop)
        acc = x
        for t in range(num_trans):
            acc = acc + sims[:, t:t + 1] * z[:, t * d:(t + 1) * d]

        out_ref[...] = acc
        sims_ref[...] = sims

    return kernel


@functools.partial(jax.jit, static_argnames=("tile_n",))
def data_transformer_x(x, w, b, p, *, tile_n=512):
    """x: (B,S,D); w: (T,D,D) torch-layout (out,in); b: (T,D); p: (T,1,D)."""
    B, S, D = x.shape
    T = w.shape[0]
    N = B * S

    # Row tile: multiple of 128 (lane-clean sims store, big MXU M); pad N.
    tile = min(_round_up(N, 128), max(128, _round_up(tile_n, 128)))
    n_pad = _round_up(N, tile)

    x2 = x.reshape(N, D).astype(jnp.float32)
    if n_pad != N:
        x2 = jnp.pad(x2, ((0, n_pad - N), (0, 0)))        # zero rows (discarded later)

    # Concatenated weight: columns [t*D:(t+1)*D] = W_t^T, last T columns = p_hat^T
    w_cat = jnp.transpose(w, (2, 0, 1)).reshape(D, T * D).astype(jnp.float32)
    p2 = p.reshape(T, D).astype(jnp.float32)
    p_norm = jnp.sqrt(jnp.sum(p2 * p2, axis=1, keepdims=True))
    p_hat = p2 / jnp.maximum(p_norm, 1e-12)               # loop-invariant: normalize once
    w_big = jnp.concatenate([w_cat, p_hat.T], axis=1)     # (D, T*D + T)

    b_big = jnp.concatenate(
        [b.astype(jnp.float32).reshape(1, T * D), jnp.zeros((1, T), jnp.float32)],
        axis=1)                                           # (1, T*D + T)

    w_cols = T * D + T

    # Explicit scoped-VMEM limit (never below the 32 MiB default; headroom for
    # double-buffered resident weights at production D/T on v7x's 64 MiB VMEM).
    per_step = 2 * tile * (2 * D + T) * 4                 # x/out/sims, double-buffered
    resident = 2 * (D + 1) * w_cols * 4                   # weights + bias
    scratch = 6 * tile * w_cols * 4                       # z + temporaries headroom
    vmem_limit = max(32 * 1024 * 1024,
                     min(2 * (per_step + resident + scratch), 112 * 1024 * 1024))

    out, sims = pl.pallas_call(
        _make_x_kernel(T, D),
        out_shape=(jax.ShapeDtypeStruct((n_pad, D), jnp.float32),
                   jax.ShapeDtypeStruct((n_pad, T), jnp.float32)),
        grid_spec=pltpu.PrefetchScalarGridSpec(
            num_scalar_prefetch=0,
            grid=(n_pad // tile,),
            in_specs=[
                pl.BlockSpec((tile, D), lambda i: (i, 0)),      # x row tile
                pl.BlockSpec((D, w_cols), lambda i: (0, 0)),    # fused weights (resident)
                pl.BlockSpec((1, w_cols), lambda i: (0, 0)),    # fused bias (resident)
            ],
            out_specs=[
                pl.BlockSpec((tile, D), lambda i: (i, 0)),
                pl.BlockSpec((tile, T), lambda i: (i, 0)),
            ],
        ),
        compiler_params=pltpu.CompilerParams(
            dimension_semantics=("parallel",),
            vmem_limit_bytes=vmem_limit,
        ),
    )(x2, w_big, b_big)

    weighted_sum = out[:N].reshape(B, S, D)
    # match PyTorch softmax_similarities layout: (T, B, S, 1)
    softmax_similarities = jnp.transpose(sims[:N]).reshape(T, B, S, 1)
    return weighted_sum, softmax_similarities


# ---------------------------------------------------------------------------
# Module wrapper (stateful temp_similarities, like the PyTorch module)
# ---------------------------------------------------------------------------
class DataTransformer:
    def __init__(self, input_size, num_trans, key):
        self.input_size = input_size
        self.y_size = 1
        self.num_trans = num_trans
        k = jax.random.split(key, 5)
        bound_x = 1.0 / jnp.sqrt(input_size)
        bound_y = 1.0  # 1/sqrt(1)
        # nn.Linear(input_size, input_size) x num_trans : weight (out,in), bias (out,)
        self.wx = jax.random.uniform(k[0], (num_trans, input_size, input_size),
                                     jnp.float32, -bound_x, bound_x)
        self.bx = jax.random.uniform(k[1], (num_trans, input_size),
                                     jnp.float32, -bound_x, bound_x)
        # nn.Linear(1, 1) x num_trans
        self.wy = jax.random.uniform(k[2], (num_trans, 1, 1),
                                     jnp.float32, -bound_y, bound_y)
        self.by = jax.random.uniform(k[3], (num_trans, 1),
                                     jnp.float32, -bound_y, bound_y)
        # p_vectors = torch.rand(num_trans, 1, input_size)
        self.p = jax.random.uniform(k[4], (num_trans, 1, input_size), jnp.float32)
        self.temp_similarities = None

    def forward(self, input_data, is_y: bool = False):
        if not is_y:
            out, sims = data_transformer_x(input_data, self.wx, self.bx, self.p)
            self.temp_similarities = sims
            return out
        # TODO(synk): y-path kept in plain JAX — a (B,S,1) scalar affine +
        # weighted sum is too small to benefit from a dedicated Pallas kernel.
        if self.temp_similarities is None:
            raise RuntimeError("x must be put into the transformer before y")
        T = self.num_trans
        sims = self.temp_similarities                      # (T, B, S, 1)
        transformed = (input_data[None] * self.wy.reshape(T, 1, 1, 1)
                       + self.by.reshape(T, 1, 1, 1))       # (T, B, S, 1)
        out = jnp.sum(sims * transformed, axis=0)
        self.temp_similarities = None
        return out


# ---------------------------------------------------------------------------
# Pure-JAX reference of the PyTorch x-path forward (for a sanity check)
# ---------------------------------------------------------------------------
def _reference_forward_x(x, w, b, p):
    transformed = jnp.einsum('bsd,ted->tbse', x, w) + b[:, None, None, :]
    x_norm = jnp.linalg.norm(x, axis=2, keepdims=True)[None]       # (1,B,S,1)
    p_norm = jnp.linalg.norm(p, axis=2, keepdims=True)[:, None]    # (T,1,1,1)
    dot = jnp.sum(x[None] * p[:, None], axis=3, keepdims=True)     # (T,B,S,1)
    cos = dot / (x_norm * p_norm)
    sims = jax.nn.softmax(cos, axis=0)
    out = jnp.sum(sims * transformed, axis=0) + x
    return out, sims


if __name__ == "__main__":
    key = jax.random.PRNGKey(0)
    k_model, k_x, k_y = jax.random.split(key, 3)

    B, S, D, T = 2, 8, 32, 4
    model = DataTransformer(input_size=D, num_trans=T, key=k_model)

    x = jax.random.normal(k_x, (B, S, D), jnp.float32)

    # x-path through the Pallas kernel
    out_x = model.forward(x, is_y=False)
    jax.block_until_ready(out_x)

    # sanity check against pure-JAX reference
    ref_out, ref_sims = _reference_forward_x(x, model.wx, model.bx, model.p)
    assert out_x.shape == (B, S, D)
    assert jnp.allclose(out_x, ref_out, rtol=1e-2, atol=1e-2)
    assert jnp.allclose(model.temp_similarities, ref_sims, rtol=1e-2, atol=1e-2)

    # y-path (consumes stored similarities, like the PyTorch module)
    y = jax.random.normal(k_y, (B, S, 1), jnp.float32)
    out_y = model.forward(y, is_y=True)
    jax.block_until_ready(out_y)
    assert out_y.shape == (B, S, 1)

    print("KERNEL_OK")
</pallas_src>

<mosaic_0001>
module attributes {stable_mosaic.version = 11 : i64} {
  func.func @kernel(%arg0: i32, %arg1: memref<128x32xf32, #tpu.memory_space<vmem>>, %arg2: memref<32x132xf32, #tpu.memory_space<vmem>>, %arg3: memref<1x132xf32, #tpu.memory_space<vmem>>, %arg4: memref<128x32xf32, #tpu.memory_space<vmem>>, %arg5: memref<128x4xf32, #tpu.memory_space<vmem>>) attributes {dimension_semantics = [#tpu.dimension_semantics<parallel>], iteration_bounds = array<i64: 1>, scalar_prefetch = 0 : i64, scratch_operands = 0 : i64, tpu.core_type = #tpu.core_type<tc>, window_params = [{transform_indices = @transform_0, window_bounds = array<i64: 128, 32>}, {pipeline_mode = #tpu.pipeline_mode<synchronous>, transform_indices = @transform_1, window_bounds = array<i64: 32, 132>}, {pipeline_mode = #tpu.pipeline_mode<synchronous>, transform_indices = @transform_2, window_bounds = array<i64: 1, 132>}, {transform_indices = @transform_3, window_bounds = array<i64: 128, 32>}, {transform_indices = @transform_4, window_bounds = array<i64: 128, 4>}]} {
    %c0 = arith.constant 0 : index
    %c0_0 = arith.constant 0 : index
    %0 = vector.load %arg1[%c0, %c0_0] : memref<128x32xf32, #tpu.memory_space<vmem>>, vector<128x32xf32>
    %c0_1 = arith.constant 0 : index
    %c0_2 = arith.constant 0 : index
    %1 = vector.load %arg2[%c0_1, %c0_2] : memref<32x132xf32, #tpu.memory_space<vmem>>, vector<32x132xf32>
    %c0_3 = arith.constant 0 : index
    %c0_4 = arith.constant 0 : index
    %2 = vector.load %arg3[%c0_3, %c0_4] : memref<1x132xf32, #tpu.memory_space<vmem>>, vector<1x132xf32>
    %cst = arith.constant dense<0.000000e+00> : vector<128x132xf32>
    %3 = tpu.matmul %0, %1, %cst {dimension_numbers = #tpu.dot_dimension_numbers<[1], [0], [0], [1], [0, 0, 1, 1], [], []>} : vector<128x32xf32>, vector<32x132xf32>, vector<128x132xf32> -> vector<128x132xf32>
    %4 = vector.broadcast %2 : vector<1x132xf32> to vector<128x132xf32>
    %5 = arith.addf %3, %4 : vector<128x132xf32>
    %6 = arith.mulf %0, %0 : vector<128x32xf32>
    %cst_5 = arith.constant dense<0.000000e+00> : vector<128xf32>
    %7 = vector.multi_reduction <add>, %6, %cst_5 [1] : vector<128x32xf32> to vector<128xf32>
    %8 = vector.shape_cast %7 : vector<128xf32> to vector<128x1xf32>
    %cst_6 = arith.constant 9.99999996E-13 : f32
    %9 = vector.broadcast %cst_6 : f32 to vector<128x1xf32>
    %10 = arith.addf %8, %9 : vector<128x1xf32>
    %11 = math.rsqrt %10 : vector<128x1xf32>
    %12 = vector.extract_strided_slice %5 {offsets = [0, 128], sizes = [128, 4], strides = [1, 1]} : vector<128x132xf32> to vector<128x4xf32>
    %13 = vector.broadcast %11 : vector<128x1xf32> to vector<128x4xf32>
    %14 = arith.mulf %12, %13 : vector<128x4xf32>
    %cst_7 = arith.constant dense<0xFF800000> : vector<128xf32>
    %15 = vector.multi_reduction <maximumf>, %14, %cst_7 [1] : vector<128x4xf32> to vector<128xf32>
    %16 = vector.shape_cast %15 : vector<128xf32> to vector<128x1xf32>
    %17 = vector.broadcast %16 : vector<128x1xf32> to vector<128x4xf32>
    %18 = arith.subf %14, %17 : vector<128x4xf32>
    %19 = math.exp %18 : vector<128x4xf32>
    %cst_8 = arith.constant dense<0.000000e+00> : vector<128xf32>
    %20 = vector.multi_reduction <add>, %19, %cst_8 [1] : vector<128x4xf32> to vector<128xf32>
    %21 = vector.shape_cast %20 : vector<128xf32> to vector<128x1xf32>
    %22 = tpu.reciprocal %21 {approx = true} : vector<128x1xf32> -> vector<128x1xf32>
    %23 = vector.broadcast %22 : vector<128x1xf32> to vector<128x4xf32>
    %24 = arith.mulf %19, %23 : vector<128x4xf32>
    %25 = vector.extract_strided_slice %24 {offsets = [0, 0], sizes = [128, 1], strides = [1, 1]} : vector<128x4xf32> to vector<128x1xf32>
    %26 = vector.extract_strided_slice %5 {offsets = [0, 0], sizes = [128, 32], strides = [1, 1]} : vector<128x132xf32> to vector<128x32xf32>
    %27 = vector.broadcast %25 : vector<128x1xf32> to vector<128x32xf32>
    %28 = arith.mulf %27, %26 : vector<128x32xf32>
    %29 = arith.addf %0, %28 : vector<128x32xf32>
    %30 = vector.extract_strided_slice %24 {offsets = [0, 1], sizes = [128, 1], strides = [1, 1]} : vector<128x4xf32> to vector<128x1xf32>
    %31 = vector.extract_strided_slice %5 {offsets = [0, 32], sizes = [128, 32], strides = [1, 1]} : vector<128x132xf32> to vector<128x32xf32>
    %32 = vector.broadcast %30 : vector<128x1xf32> to vector<128x32xf32>
    %33 = arith.mulf %32, %31 : vector<128x32xf32>
    %34 = arith.addf %29, %33 : vector<128x32xf32>
    %35 = vector.extract_strided_slice %24 {offsets = [0, 2], sizes = [128, 1], strides = [1, 1]} : vector<128x4xf32> to vector<128x1xf32>
    %36 = vector.extract_strided_slice %5 {offsets = [0, 64], sizes = [128, 32], strides = [1, 1]} : vector<128x132xf32> to vector<128x32xf32>
    %37 = vector.broadcast %35 : vector<128x1xf32> to vector<128x32xf32>
    %38 = arith.mulf %37, %36 : vector<128x32xf32>
    %39 = arith.addf %34, %38 : vector<128x32xf32>
    %40 = vector.extract_strided_slice %24 {offsets = [0, 3], sizes = [128, 1], strides = [1, 1]} : vector<128x4xf32> to vector<128x1xf32>
    %41 = vector.extract_strided_slice %5 {offsets = [0, 96], sizes = [128, 32], strides = [1, 1]} : vector<128x132xf32> to vector<128x32xf32>
    %42 = vector.broadcast %40 : vector<128x1xf32> to vector<128x32xf32>
    %43 = arith.mulf %42, %41 : vector<128x32xf32>
    %44 = arith.addf %39, %43 : vector<128x32xf32>
    %c0_9 = arith.constant 0 : index
    %c0_10 = arith.constant 0 : index
    %45 = vector.load %arg4[%c0_9, %c0_10] : memref<128x32xf32, #tpu.memory_space<vmem>>, vector<128x32xf32>
    tpu.vector_store %arg4[%c0_9, %c0_10], %44 {strides = array<i32>} : memref<128x32xf32, #tpu.memory_space<vmem>>, vector<128x32xf32>,
    %c0_11 = arith.constant 0 : index
    %c0_12 = arith.constant 0 : index
    %46 = vector.load %arg5[%c0_11, %c0_12] : memref<128x4xf32, #tpu.memory_space<vmem>>, vector<128x4xf32>
    tpu.vector_store %arg5[%c0_11, %c0_12], %24 {strides = array<i32>} : memref<128x4xf32, #tpu.memory_space<vmem>>, vector<128x4xf32>,
    return
  }
  func.func @transform_0(%arg0: i32) -> (i32, i32) {
    %c0_i32 = arith.constant 0 : i32
    %c0_i32_0 = arith.constant 0 : i32
    return %arg0, %c0_i32 : i32, i32
  }
  func.func @transform_1(%arg0: i32) -> (i32, i32) {
    %c0_i32 = arith.constant 0 : i32
    %c0_i32_0 = arith.constant 0 : i32
    %c0_i32_1 = arith.constant 0 : i32
    return %c0_i32, %c0_i32_0 : i32, i32
  }
  func.func @transform_2(%arg0: i32) -> (i32, i32) {
    %c0_i32 = arith.constant 0 : i32
    %c0_i32_0 = arith.constant 0 : i32
    %c0_i32_1 = arith.constant 0 : i32
    return %c0_i32, %c0_i32_0 : i32, i32
  }
  func.func @transform_3(%arg0: i32) -> (i32, i32) {
    %c0_i32 = arith.constant 0 : i32
    %c0_i32_0 = arith.constant 0 : i32
    return %arg0, %c0_i32 : i32, i32
  }
  func.func @transform_4(%arg0: i32) -> (i32, i32) {
    %c0_i32 = arith.constant 0 : i32
    %c0_i32_0 = arith.constant 0 : i32
    return %arg0, %c0_i32 : i32, i32
  }
}

</mosaic_0001>

<bundles_post_ra>
// kernel: data_transformer_x.1
= control target key start
LH: loop header
LB: loop body
LE: loop exit
PB: predicated region body
PF: predicated region fallthrough
CT: control target
= control target key end

     0   :  { %v1375_v3 = vmov 0.0   ;;  %vm52_vm0 = vcmask 261120   ;;  %v42_v61 = vlaneseq  ;;  %vm374_vm1 = vcmask 31744   ;;  %s1381_s14 = smov 64   ;;  %s1382_s15 = smov 32   ;;  %s2270_s1 = inlined_call_operand.vmem [shape: f32[32,132], index: 1, kind: input, shape index: {}]   ;;  %s2271_s0 = inlined_call_operand.vmem [shape: f32[128,32], index: 0, kind: input, shape index: {}]   ;;  %s2272_s2 = inlined_call_operand.vmem [shape: f32[1,132], index: 2, kind: input, shape index: {}]   ;;  %s2273_s4 = inlined_call_operand.vmem [shape: f32[128,4], index: 4, kind: output, shape index: {1}]   ;;  %s2274_s3 = inlined_call_operand.vmem [shape: f32[128,32], index: 3, kind: output, shape index: {0}]  }
   0x1   :  { %v33_v0 = vld [vmem:[%s2270_s1 + $0x8] sm:$0xff]  ;;  %v35_v1 = vld [vmem:[%s2270_s1 + $0x18] sm:$0xff]  ;;  %v32_v2 = vld [vmem:[%s2270_s1] sm:$0xff]  ;;  %165 = vmatprep.mubr.f32.mxu0 %v1375_v3  ;;  %213 = vmatprep.mubr.f32.mxu1 %v1375_v3 }
   0x2   :  { %v1199_v4 = vpack.c.bf16 %v35_v1, %v33_v0  ;;  %v34_v5 = vld [vmem:[%s2270_s1 + $0x10] sm:$0xff]  ;;  %v37_v6 = vld [vmem:[%s2270_s1 + $0x28] sm:$0xff]  ;;  %v39_v7 = vld [vmem:[%s2270_s1 + $0x38] sm:$0xff]  ;;  %v43_v62 = vshrl.u32 %v42_v61, 7 }
   0x3   :  { %v1201_v8 = vpack.c.bf16 %v34_v5, %v32_v2  ;;  %v1203_v9 = vpack.c.bf16 %v39_v7, %v37_v6  ;;  %v36_v10 = vld [vmem:[%s2270_s1 + $0x20] sm:$0xff]  ;;  %v38_v11 = vld [vmem:[%s2270_s1 + $0x30] sm:$0xff]  ;;  %v17_v13 = vld [vmem:[%s2271_s0 + $0x8] sm:$0xff] }
   0x4   :  { %v16_v12 = vld [vmem:[%s2271_s0] sm:$0xff]  ;;  %1200 = vmatprep.subr.bf16.mxu0 %v1199_v4  ;;  %1207 = vmatprep.subr.bf16.mxu1 %v1199_v4  ;;  %v18_v14 = vld [vmem:[%s2271_s0 + $0x10] sm:$0xff]  ;;  %v1205_v16 = vpack.c.bf16 %v38_v11, %v36_v10  ;;  %v263_v17 = vmul.f32 %v17_v13, %v17_v13  ;;  %v19_v19 = vld [vmem:[%s2271_s0 + $0x18] sm:$0xff]  ;;  %v44_v0 = vsub.s32 0, %v43_v62 }
   0x5   :  { %v262_v15 = vmul.f32 %v16_v12, %v16_v12  ;;  %1202 = vmatpush1.bf16.msra.mxu0 %v1201_v8  ;;  %1209 = vmatpush1.bf16.msra.mxu1 %v1201_v8  ;;  %v264_v18 = vmul.f32 %v18_v14, %v18_v14  ;;  %v20_v21 = vld [vmem:[%s2271_s0 + $0x20] sm:$0xff]  ;;  %v265_v23 = vmul.f32 %v19_v19, %v19_v19  ;;  %v1458_v27 = vld [vmem:[%s2271_s0 + $0x28] sm:$0xff]  ;;  %v1463_v28 = vld [vmem:[%s2271_s0 + $0x30] sm:$0xff] }
   0x6   :  { %1204 = vmatprep.subr.bf16.mxu0 %v1203_v9  ;;  %1208 = vmatprep.subr.bf16.mxu1 %v1203_v9  ;;  %v281_v24 = vsel %vm52_vm0, %v263_v17, 0.0  ;;  %v266_v25 = vmul.f32 %v20_v21, %v20_v21  ;;  %v24_v26 = vld [vmem:[%s2271_s0 + $0x40] sm:$0xff]  ;;  %v267_v30 = vmul.f32 %v1458_v27, %v1458_v27  ;;  %v268_v32 = vmul.f32 %v1463_v28, %v1463_v28  ;;  %v25_v33 = vld [vmem:[%s2271_s0 + $0x48] sm:$0xff]  ;;  %v1481_v34 = vld [vmem:[%s2271_s0 + $0x38] sm:$0xff] }
   0x7   :  { %v278_v20 = vsel %vm52_vm0, %v262_v15, 0.0  ;;  %v284_v22 = vsel %vm52_vm0, %v264_v18, 0.0  ;;  %v287_v29 = vsel %vm52_vm0, %v265_v23, 0.0  ;;  %v269_v36 = vmul.f32 %v1481_v34, %v1481_v34  ;;  %v26_v39 = vld [vmem:[%s2271_s0 + $0x50] sm:$0xff]  ;;  %v27_v44 = vld [vmem:[%s2271_s0 + $0x58] sm:$0xff]  ;;  %v28_v45 = vld [vmem:[%s2271_s0 + $0x60] sm:$0xff] }
   0x8   :  { %279 = vadd.xlane.f32.xlu0 %v278_v20  ;;  %285 = vadd.xlane.f32.xlu1 %v284_v22  ;;  %v290_v31 = vsel %vm52_vm0, %v266_v25, 0.0  ;;  %v293_v35 = vsel %vm52_vm0, %v267_v30, 0.0  ;;  %v296_v37 = vsel %vm52_vm0, %v268_v32, 0.0  ;;  %v270_v38 = vmul.f32 %v24_v26, %v24_v26  ;;  %v29_v50 = vld [vmem:[%s2271_s0 + $0x68] sm:$0xff]  ;;  %v30_v51 = vld [vmem:[%s2271_s0 + $0x70] sm:$0xff]  ;;  %v31_v56 = vld [vmem:[%s2271_s0 + $0x78] sm:$0xff] }
   0x9   :  { %1206 = vmatpush1.bf16.msra.mxu0 %v1205_v16  ;;  %1210 = vmatpush1.bf16.msra.mxu1 %v1205_v16  ;;  %v299_v40 = vsel %vm52_vm0, %v269_v36, 0.0  ;;  %v271_v41 = vmul.f32 %v25_v33, %v25_v33  ;;  %v272_v43 = vmul.f32 %v26_v39, %v26_v39  ;;  %v273_v47 = vmul.f32 %v27_v44, %v27_v44  ;;  %v40_v63 = vld [vmem:[%s2272_s2] sm:$0x3] }
   0xa   :  { %v302_v42 = vsel %vm52_vm0, %v270_v38, 0.0  ;;  %v274_v49 = vmul.f32 %v28_v45, %v28_v45  ;;  %v275_v53 = vmul.f32 %v29_v50, %v29_v50  ;;  %v276_v55 = vmul.f32 %v30_v51, %v30_v51 }
   0xb   :  { %v305_v46 = vsel %vm52_vm0, %v271_v41, 0.0  ;;  %v308_v48 = vsel %vm52_vm0, %v272_v43, 0.0  ;;  %v311_v52 = vsel %vm52_vm0, %v273_v47, 0.0  ;;  %v277_v58 = vmul.f32 %v31_v56, %v31_v56 }
   0xc   :  { %282 = vadd.xlane.f32.xlu0 %v281_v24  ;;  %1183 = vmatmul.mubr.msk.f32.vlgmr.msra.gmra.mrb[0].mxu0 %vm52_vm0, %v16_v12  ;;  %v314_v54 = vsel %vm52_vm0, %v274_v49, 0.0  ;;  %v317_v57 = vsel %vm52_vm0, %v275_v53, 0.0  ;;  %v320_v59 = vsel %vm52_vm0, %v276_v55, 0.0  ;;  %v1546_v1 = vrot.slane %v40_v63, %v44_v0 }
   0xd   :  { %1191 = vmatmul.mubr.msk.f32.vlgmr.msra.gmra.mrb[0].mxu1 %vm52_vm0, %v24_v26  ;;  %171 = vmatprep.mubr.f32.mxu0 %v1375_v3  ;;  %v323_v60 = vsel %vm52_vm0, %v277_v58, 0.0  ;;  %v48_v18 = vsub.s32 1, %v43_v62 }
   0xe   :  { %219 = vmatprep.mubr.f32.mxu1 %v1375_v3  ;;  %288 = vadd.xlane.f32.xlu1 %v287_v29 }
   0xf   :  { %v1552_v22 = vrot.slane %v40_v63, %v48_v18 }
  0x10   :  { %291 = vadd.xlane.f32.xlu0 %v290_v31  ;;  %1184 = vmatmul.mubr.msk.f32.gmra.mrb[2].mxu0 %vm52_vm0, %v17_v13 }
  0x11   :  { %1192 = vmatmul.mubr.msk.f32.gmra.mrb[2].mxu1 %vm52_vm0, %v25_v33  ;;  %177 = vmatprep.mubr.f32.mxu0 %v1375_v3 }
  0x12   :  { %225 = vmatprep.mubr.f32.mxu1 %v1375_v3  ;;  %294 = vadd.xlane.f32.xlu1 %v293_v35 }
  0x14   :  { %297 = vadd.xlane.f32.xlu0 %v296_v37  ;;  %1185 = vmatmul.mubr.msk.f32.gmra.mrb[4].mxu0 %vm52_vm0, %v18_v14 }
  0x15   :  { %1193 = vmatmul.mubr.msk.f32.gmra.mrb[4].mxu1 %vm52_vm0, %v26_v39  ;;  %183 = vmatprep.mubr.f32.mxu0 %v1375_v3 }
  0x16   :  { %231 = vmatprep.mubr.f32.mxu1 %v1375_v3  ;;  %300 = vadd.xlane.f32.xlu1 %v299_v40 }
  0x18   :  { %303 = vadd.xlane.f32.xlu0 %v302_v42  ;;  %1186 = vmatmul.mubr.msk.f32.gmra.mrb[6].mxu0 %vm52_vm0, %v19_v19 }
  0x19   :  { %1194 = vmatmul.mubr.msk.f32.gmra.mrb[6].mxu1 %vm52_vm0, %v27_v44  ;;  %189 = vmatprep.mubr.f32.mxu0 %v1375_v3 }
  0x1a   :  { %237 = vmatprep.mubr.f32.mxu1 %v1375_v3  ;;  %306 = vadd.xlane.f32.xlu1 %v305_v46 }
  0x1c   :  { %309 = vadd.xlane.f32.xlu0 %v308_v48  ;;  %1187 = vmatmul.mubr.msk.f32.gmra.mrb[8].mxu0 %vm52_vm0, %v20_v21 }
  0x1d   :  { %1195 = vmatmul.mubr.msk.f32.gmra.mrb[8].mxu1 %vm52_vm0, %v28_v45  ;;  %195 = vmatprep.mubr.f32.mxu0 %v1375_v3 }
  0x1e   :  { %243 = vmatprep.mubr.f32.mxu1 %v1375_v3  ;;  %312 = vadd.xlane.f32.xlu1 %v311_v52 }
  0x20   :  { %315 = vadd.xlane.f32.xlu0 %v314_v54  ;;  %1188 = vmatmul.mubr.msk.f32.gmra.mrb[10].mxu0 %vm52_vm0, %v1458_v27 }
  0x21   :  { %1196 = vmatmul.mubr.msk.f32.gmra.mrb[10].mxu1 %vm52_vm0, %v29_v50  ;;  %201 = vmatprep.mubr.f32.mxu0 %v1375_v3 }
  0x22   :  { %249 = vmatprep.mubr.f32.mxu1 %v1375_v3  ;;  %318 = vadd.xlane.f32.xlu1 %v317_v57 }
  0x24   :  { %321 = vadd.xlane.f32.xlu0 %v320_v59  ;;  %1189 = vmatmul.mubr.msk.f32.gmra.mrb[12].mxu0 %vm52_vm0, %v1463_v28 }
  0x25   :  { %1197 = vmatmul.mubr.msk.f32.gmra.mrb[12].mxu1 %vm52_vm0, %v30_v51  ;;  %207 = vmatprep.mubr.f32.mxu0 %v1375_v3 }
  0x26   :  { %255 = vmatprep.mubr.f32.mxu1 %v1375_v3  ;;  %324 = vadd.xlane.f32.xlu1 %v323_v60 }
  0x28   :  { %1190 = vmatmul.mubr.msk.f32.gmra.mrb[14].mxu0 %vm52_vm0, %v1481_v34 }
  0x29   :  { %1198 = vmatmul.mubr.msk.f32.gmra.mrb[14].mxu1 %vm52_vm0, %v31_v56 }
  0x95   :  { %v280_v2 = vpop.xlane.xlu0 %279  ;;  %v286_v4 = vpop.xlane.xlu1 %285 }
  0x96   :  { %v326_v13 = vadd.f32 1e-12, %v280_v2  ;;  %v328_v17 = vadd.f32 1e-12, %v286_v4 }
  0x99   :  { %v283_v5 = vpop.xlane.xlu0 %282 }
  0x9a   :  { %v327_v16 = vadd.f32 1e-12, %v283_v5 }
  0x9b   :  { %v289_v6 = vpop.xlane.xlu1 %288 }
  0x9c   :  { %v329_v21 = vadd.f32 1e-12, %v289_v6 }
  0x9d   :  { %v292_v3 = vpop.xlane.xlu0 %291 }
  0x9e   :  { %v330_v42 = vadd.f32 1e-12, %v292_v3 }
  0x9f   :  { %v295_v7 = vpop.xlane.xlu1 %294 }
  0xa0   :  { %v331_v47 = vadd.f32 1e-12, %v295_v7 }
  0xa1   :  { %v1548_v8 = vpop.xlane.xlu0 %297 }
  0xa3   :  { %v1550_v9 = vpop.xlane.xlu1 %300 }
  0xa5   :  { %v304_v10 = vpop.xlane.xlu0 %303 }
  0xa6   :  { %v334_v11 = vadd.f32 1e-12, %v304_v10 }
  0xa7   :  { %v307_v12 = vpop.xlane.xlu1 %306 }
  0xa8   :  { %1263 = vrsqrt.f32 %v334_v11  ;;  %v335_v14 = vadd.f32 1e-12, %v307_v12 }
  0xa9   :  { %v310_v15 = vpop.xlane.xlu0 %309  ;;  %1265 = vrsqrt.f32 %v326_v13 }
  0xaa   :  { %1267 = vrsqrt.f32 %v335_v14  ;;  %v336_v19 = vadd.f32 1e-12, %v310_v15 }
  0xab   :  { %v313_v20 = vpop.xlane.xlu1 %312  ;;  %1269 = vrsqrt.f32 %v327_v16  ;;  %v332_v16 = vadd.f32 1e-12, %v1548_v8 }
  0xac   :  { %1271 = vrsqrt.f32 %v328_v17  ;;  %v337_v23 = vadd.f32 1e-12, %v313_v20 }
  0xad   :  { %1273 = vrsqrt.f32 %v336_v19  ;;  %v316_v24 = vpop.xlane.xlu0 %315 }
  0xae   :  { %1275 = vrsqrt.f32 %v329_v21  ;;  %v338_v35 = vadd.f32 1e-12, %v316_v24 }
  0xaf   :  { %1277 = vrsqrt.f32 %v337_v23  ;;  %v319_v36 = vpop.xlane.xlu1 %318 }
  0xb0   :  { %1279 = vrsqrt.f32 %v338_v35  ;;  %v339_v52 = vadd.f32 1e-12, %v319_v36 }
  0xb1   :  { %v322_v53 = vpop.xlane.xlu0 %321  ;;  %1281 = vrsqrt.f32 %v330_v42 }
  0xb2   :  { %v1264_v27 = vpop.eup %1263  ;;  %1283 = vrsqrt.f32 %v331_v47  ;;  %v340_v6 = vadd.f32 1e-12, %v322_v53 }
  0xb3   :  { %v1266_v34 = vpop.eup %1265  ;;  %1285 = vrsqrt.f32 %v339_v52  ;;  %v325_v3 = vpop.xlane.xlu1 %324 }
  0xb4   :  { %v1268_v41 = vpop.eup %1267  ;;  %1287 = vrsqrt.f32 %v340_v6 }
  0xb5   :  { %v1270_v51 = vpop.eup %1269  ;;  %1289 = vrsqrt.f32 %v332_v16 }
  0xb6   :  { %v1272_v54 = vpop.eup %1271 }
  0xb7   :  { %v1274_v60 = vpop.eup %1273 }
  0xb8   :  { %v1276_v7 = vpop.eup %1275 }
  0xb9   :  { %v1278_v15 = vpop.eup %1277 }
  0xdf   :  { %v167_v25 = vpop.f32.mrb[0].mxu0 }
  0xe0   :  { %v215_v26 = vpop.f32.mrb[0].mxu1  ;;  %v1555_v28 = vadd.f32 %v167_v25, %v1546_v1  ;;  %v169_v29 = vpop.f32.mrb[1].mxu0  ;;  %v341_v25 = vadd.f32 1e-12, %v325_v3 }
  0xe1   :  { %v1558_v30 = vadd.f32 %v215_v26, %v1546_v1  ;;  %v217_v31 = vpop.f32.mrb[1].mxu1  ;;  %v170_v32 = vadd.f32 %v169_v29, %v1552_v22 }
  0xe2   :  { %v218_v33 = vadd.f32 %v217_v31, %v1552_v22  ;;  %1291 = vrsqrt.f32 %v341_v25 }
  0xe3   :  { %v173_v37 = vpop.f32.mrb[2].mxu0  ;;  %v1562_v38 = vmul.f32 %v1266_v34, %v170_v32  ;;  %v1280_v32 = vpop.eup %1279 }
  0xe4   :  { %v221_v39 = vpop.f32.mrb[2].mxu1  ;;  %v1564_v40 = vmul.f32 %v1264_v27, %v218_v33  ;;  %v1567_v43 = vadd.f32 %v173_v37, %v1546_v1  ;;  %v175_v44 = vpop.f32.mrb[3].mxu0  ;;  %v333_v33 = vadd.f32 1e-12, %v1550_v9 }
  0xe5   :  { %v1570_v45 = vadd.f32 %v221_v39, %v1546_v1  ;;  %v223_v46 = vpop.f32.mrb[3].mxu1  ;;  %v176_v48 = vadd.f32 %v175_v44, %v1552_v22  ;;  %v375_v49 = vsel %vm374_vm1, %v1562_v38, -inf  ;;  %v1282_v44 = vpop.eup %1281 }
  0xe6   :  { %v224_v50 = vadd.f32 %v223_v46, %v1552_v22  ;;  %376 = vmax.xlane.f32.xlu0 %v375_v49  ;;  %v399_v57 = vsel %vm374_vm1, %v1564_v40, -inf  ;;  %v1284_v9 = vpop.eup %1283  ;;  %1293 = vrsqrt.f32 %v333_v33 }
  0xe7   :  { %v179_v55 = vpop.f32.mrb[4].mxu0  ;;  %v1576_v56 = vmul.f32 %v1270_v51, %v176_v48  ;;  %v1286_v51 = vpop.eup %1285 }
  0xe8   :  { %v227_v58 = vpop.f32.mrb[4].mxu1  ;;  %v1580_v59 = vmul.f32 %v1268_v41, %v224_v50  ;;  %v1583_v61 = vadd.f32 %v179_v55, %v1546_v1  ;;  %v181_v62 = vpop.f32.mrb[5].mxu0 }
  0xe9   :  { %v1586_v63 = vadd.f32 %v227_v58, %v1546_v1  ;;  %v229_v0 = vpop.f32.mrb[5].mxu1  ;;  %v182_v2 = vadd.f32 %v181_v62, %v1552_v22  ;;  %v378_v4 = vsel %vm374_vm1, %v1576_v56, -inf  ;;  %v1288_v6 = vpop.eup %1287 }
  0xea   :  { %v230_v5 = vadd.f32 %v229_v0, %v1552_v22  ;;  %379 = vmax.xlane.f32.xlu1 %v378_v4  ;;  %400 = vmax.xlane.f32.xlu0 %v399_v57  ;;  %v402_v11 = vsel %vm374_vm1, %v1580_v59, -inf }
  0xeb   :  { %v185_v10 = vpop.f32.mrb[6].mxu0  ;;  %v1594_v12 = vmul.f32 %v1272_v54, %v182_v2 }
  0xec   :  { %v233_v13 = vpop.f32.mrb[6].mxu1  ;;  %v1596_v14 = vmul.f32 %v1274_v60, %v230_v5  ;;  %v1600_v17 = vadd.f32 %v185_v10, %v1546_v1  ;;  %v187_v18 = vpop.f32.mrb[7].mxu0 }
  0xed   :  { %v1603_v19 = vadd.f32 %v233_v13, %v1546_v1  ;;  %v235_v20 = vpop.f32.mrb[7].mxu1  ;;  %v188_v21 = vadd.f32 %v187_v18, %v1552_v22  ;;  %v381_v23 = vsel %vm374_vm1, %v1594_v12, -inf  ;;  %v1290_v18 = vpop.eup %1289 }
  0xee   :  { %v236_v24 = vadd.f32 %v235_v20, %v1552_v22  ;;  %403 = vmax.xlane.f32.xlu1 %v402_v11  ;;  %382 = vmax.xlane.f32.xlu0 %v381_v23  ;;  %v405_v27 = vsel %vm374_vm1, %v1596_v14, -inf }
  0xef   :  { %v191_v8 = vpop.f32.mrb[8].mxu0  ;;  %v1609_v26 = vmul.f32 %v1276_v7, %v188_v21 }
  0xf0   :  { %v239_v29 = vpop.f32.mrb[8].mxu1  ;;  %v1613_v31 = vmul.f32 %v1278_v15, %v236_v24  ;;  %v1617_v34 = vadd.f32 %v191_v8, %v1546_v1  ;;  %v193_v35 = vpop.f32.mrb[9].mxu0 }
  0xf1   :  { %v1620_v36 = vadd.f32 %v239_v29, %v1546_v1  ;;  %v241_v37 = vpop.f32.mrb[9].mxu1  ;;  %v194_v39 = vadd.f32 %v193_v35, %v1552_v22  ;;  %v384_v41 = vsel %vm374_vm1, %v1609_v26, -inf  ;;  %v1292_v8 = vpop.eup %1291 }
  0xf2   :  { %v242_v42 = vadd.f32 %v241_v37, %v1552_v22  ;;  %385 = vmax.xlane.f32.xlu1 %v384_v41  ;;  %406 = vmax.xlane.f32.xlu0 %v405_v27  ;;  %v408_v47 = vsel %vm374_vm1, %v1613_v31, -inf  ;;  %v1294_v41 = vpop.eup %1293 }
  0xf3   :  { %v197_v46 = vpop.f32.mrb[10].mxu0  ;;  %v1628_v48 = vmul.f32 %v1282_v44, %v194_v39 }
  0xf4   :  { %v245_v49 = vpop.f32.mrb[10].mxu1  ;;  %v1630_v50 = vmul.f32 %v1280_v32, %v242_v42  ;;  %v1633_v52 = vadd.f32 %v197_v46, %v1546_v1  ;;  %v199_v53 = vpop.f32.mrb[11].mxu0 }
  0xf5   :  { %v1636_v54 = vadd.f32 %v245_v49, %v1546_v1  ;;  %v247_v55 = vpop.f32.mrb[11].mxu1  ;;  %v200_v57 = vadd.f32 %v199_v53, %v1552_v22  ;;  %v387_v58 = vsel %vm374_vm1, %v1628_v48, -inf }
  0xf6   :  { %v248_v60 = vadd.f32 %v247_v55, %v1552_v22  ;;  %409 = vmax.xlane.f32.xlu1 %v408_v47  ;;  %388 = vmax.xlane.f32.xlu0 %v387_v58  ;;  %v411_v2 = vsel %vm374_vm1, %v1630_v50, -inf }
  0xf7   :  { %v203_v62 = vpop.f32.mrb[12].mxu0  ;;  %v1642_v0 = vmul.f32 %v1284_v9, %v200_v57 }
  0xf8   :  { %v251_v4 = vpop.f32.mrb[12].mxu1  ;;  %v1646_v5 = vmul.f32 %v1286_v51, %v248_v60  ;;  %v1649_v3 = vadd.f32 %v203_v62, %v1546_v1  ;;  %v205_v7 = vpop.f32.mrb[13].mxu0 }
  0xf9   :  { %v1652_v10 = vadd.f32 %v251_v4, %v1546_v1  ;;  %v253_v11 = vpop.f32.mrb[13].mxu1  ;;  %v206_v13 = vadd.f32 %v205_v7, %v1552_v22  ;;  %v390_v15 = vsel %vm374_vm1, %v1642_v0, -inf }
  0xfa   :  { %v254_v16 = vadd.f32 %v253_v11, %v1552_v22  ;;  %391 = vmax.xlane.f32.xlu1 %v390_v15  ;;  %412 = vmax.xlane.f32.xlu0 %v411_v2  ;;  %v414_v21 = vsel %vm374_vm1, %v1646_v5, -inf }
  0xfb   :  { %v209_v20 = vpop.f32.mrb[14].mxu0  ;;  %v1660_v23 = vmul.f32 %v1290_v18, %v206_v13 }
  0xfc   :  { %v257_v24 = vpop.f32.mrb[14].mxu1  ;;  %v1662_v25 = vmul.f32 %v1288_v6, %v254_v16  ;;  %v1665_v27 = vadd.f32 %v209_v20, %v1546_v1  ;;  %v211_v29 = vpop.f32.mrb[15].mxu0 }
  0xfd   :  { %v1668_v32 = vadd.f32 %v257_v24, %v1546_v1  ;;  %v259_v33 = vpop.f32.mrb[15].mxu1  ;;  %v212_v35 = vadd.f32 %v211_v29, %v1552_v22  ;;  %v393_v37 = vsel %vm374_vm1, %v1660_v23, -inf }
  0xfe   :  { %v260_v39 = vadd.f32 %v259_v33, %v1552_v22  ;;  %415 = vmax.xlane.f32.xlu1 %v414_v21  ;;  %394 = vmax.xlane.f32.xlu0 %v393_v37  ;;  %v417_v44 = vsel %vm374_vm1, %v1662_v25, -inf }
  0xff   :  { %v1674_v42 = vmul.f32 %v1294_v41, %v212_v35 }
 0x100   :  { %v1678_v9 = vmul.f32 %v1292_v8, %v260_v39 }
 0x101   :  { %v396_v1 = vsel %vm374_vm1, %v1674_v42, -inf }
 0x102   :  { %397 = vmax.xlane.f32.xlu1 %v396_v1  ;;  %418 = vmax.xlane.f32.xlu0 %v417_v44  ;;  %v420_v46 = vsel %vm374_vm1, %v1678_v9, -inf }
 0x106   :  { %421 = vmax.xlane.f32.xlu1 %v420_v46 }
 0x173   :  { %v377_v22 = vpop.xlane.xlu0 %376 }
 0x174   :  { %v423_v47 = vsub.f32 %v1562_v38, %v377_v22 }
 0x176   :  { %v439_v49 = vmul.f32 1.442695, %v423_v47 }
 0x177   :  { %v380_v51 = vpop.xlane.xlu1 %379  ;;  %v401_v53 = vpop.xlane.xlu0 %400 }
 0x178   :  { %1295 = vpow2.f32 %v439_v49  ;;  %v424_v55 = vsub.f32 %v1576_v56, %v380_v51  ;;  %v431_v57 = vsub.f32 %v1564_v40, %v401_v53 }
 0x17a   :  { %v441_v58 = vmul.f32 1.442695, %v424_v55  ;;  %v455_v60 = vmul.f32 1.442695, %v431_v57 }
 0x17b   :  { %v404_v62 = vpop.xlane.xlu1 %403  ;;  %v383_v2 = vpop.xlane.xlu0 %382 }
 0x17c   :  { %1297 = vpow2.f32 %v441_v58  ;;  %v432_v4 = vsub.f32 %v1580_v59, %v404_v62  ;;  %v425_v6 = vsub.f32 %v1594_v12, %v383_v2 }
 0x17d   :  { %1299 = vpow2.f32 %v455_v60 }
 0x17e   :  { %v457_v7 = vmul.f32 1.442695, %v432_v4  ;;  %v443_v38 = vmul.f32 1.442695, %v425_v6 }
 0x17f   :  { %v386_v11 = vpop.xlane.xlu1 %385  ;;  %v407_v13 = vpop.xlane.xlu0 %406 }
 0x180   :  { %1301 = vpow2.f32 %v457_v7  ;;  %v426_v15 = vsub.f32 %v1609_v26, %v386_v11  ;;  %v433_v56 = vsub.f32 %v1596_v14, %v407_v13 }
 0x181   :  { %1303 = vpow2.f32 %v443_v38 }
 0x182   :  { %v1691_v40 = vpop.eup %1295  ;;  %v445_v16 = vmul.f32 1.442695, %v426_v15  ;;  %v459_v18 = vmul.f32 1.442695, %v433_v56 }
 0x183   :  { %v410_v20 = vpop.xlane.xlu1 %409  ;;  %v389_v21 = vpop.xlane.xlu0 %388  ;;  %v471_v59 = vsel %vm374_vm1, %v1691_v40, 0.0 }
 0x184   :  { %1305 = vpow2.f32 %v445_v16  ;;  %v434_v12 = vsub.f32 %v1613_v31, %v410_v20  ;;  %v427_v24 = vsub.f32 %v1628_v48, %v389_v21  ;;  %472 = vadd.xlane.f32.xlu0 %v471_v59 }
 0x185   :  { %1307 = vpow2.f32 %v459_v18 }
 0x186   :  { %v1697_v26 = vpop.eup %1297  ;;  %v461_v14 = vmul.f32 1.442695, %v434_v12  ;;  %v447_v8 = vmul.f32 1.442695, %v427_v24 }
 0x187   :  { %v1699_v29 = vpop.eup %1299  ;;  %v392_v33 = vpop.xlane.xlu1 %391  ;;  %v474_v37 = vsel %vm374_vm1, %v1697_v26, 0.0 }
 0x188   :  { %v413_v35 = vpop.xlane.xlu0 %412  ;;  %1309 = vpow2.f32 %v461_v14  ;;  %v428_v39 = vsub.f32 %v1642_v0, %v392_v33  ;;  %475 = vadd.xlane.f32.xlu1 %v474_v37  ;;  %v495_v48 = vsel %vm374_vm1, %v1699_v29, 0.0 }
 0x189   :  { %v435_v31 = vsub.f32 %v1630_v50, %v413_v35  ;;  %1311 = vpow2.f32 %v447_v8  ;;  %496 = vadd.xlane.f32.xlu0 %v495_v48  ;;  %v1376_v35 = vmov 0  }
 0x18a   :  { %v1707_v41 = vpop.eup %1301  ;;  %v449_v44 = vmul.f32 1.442695, %v428_v39  ;;  %1219 = vset.pattern.permute.xlu0 %v1376_v35  ;;  %1220 = vset.pattern.permute.xlu1 %v1376_v35 }
 0x18b   :  { %v463_v1 = vmul.f32 1.442695, %v435_v31  ;;  %v1709_v46 = vpop.eup %1303  ;;  %v416_v22 = vpop.xlane.xlu1 %415  ;;  %v498_v49 = vsel %vm374_vm1, %v1707_v41, 0.0 }
 0x18c   :  { %v395_v47 = vpop.xlane.xlu0 %394  ;;  %1313 = vpow2.f32 %v449_v44  ;;  %v436_v50 = vsub.f32 %v1646_v5, %v416_v22  ;;  %499 = vadd.xlane.f32.xlu1 %v498_v49  ;;  %v477_v51 = vsel %vm374_vm1, %v1709_v46, 0.0 }
 0x18d   :  { %v429_v0 = vsub.f32 %v1660_v23, %v395_v47  ;;  %1315 = vpow2.f32 %v463_v1  ;;  %478 = vadd.xlane.f32.xlu0 %v477_v51 }
 0x18e   :  { %v1717_v53 = vpop.eup %1305  ;;  %v465_v55 = vmul.f32 1.442695, %v436_v50 }
 0x18f   :  { %v451_v57 = vmul.f32 1.442695, %v429_v0  ;;  %v1719_v58 = vpop.eup %1307  ;;  %v398_v60 = vpop.xlane.xlu1 %397  ;;  %v480_v2 = vsel %vm374_vm1, %v1717_v53, 0.0 }
 0x190   :  { %v419_v62 = vpop.xlane.xlu0 %418  ;;  %1317 = vpow2.f32 %v465_v55  ;;  %v430_v5 = vsub.f32 %v1674_v42, %v398_v60  ;;  %481 = vadd.xlane.f32.xlu1 %v480_v2  ;;  %v501_v4 = vsel %vm374_vm1, %v1719_v58, 0.0 }
 0x191   :  { %v437_v23 = vsub.f32 %v1662_v25, %v419_v62  ;;  %1319 = vpow2.f32 %v451_v57  ;;  %502 = vadd.xlane.f32.xlu0 %v501_v4 }
 0x192   :  { %v1727_v6 = vpop.eup %1309  ;;  %v453_v7 = vmul.f32 1.442695, %v430_v5 }
 0x193   :  { %v467_v38 = vmul.f32 1.442695, %v437_v23  ;;  %v1729_v11 = vpop.eup %1311  ;;  %v422_v13 = vpop.xlane.xlu1 %421  ;;  %v504_v15 = vsel %vm374_vm1, %v1727_v6, 0.0 }
 0x194   :  { %1321 = vpow2.f32 %v453_v7  ;;  %v438_v42 = vsub.f32 %v1678_v9, %v422_v13  ;;  %505 = vadd.xlane.f32.xlu1 %v504_v15  ;;  %v483_v25 = vsel %vm374_vm1, %v1729_v11, 0.0  ;;  %v1378_v15 = vmov 2  }
 0x195   :  { %1323 = vpow2.f32 %v467_v38  ;;  %484 = vadd.xlane.f32.xlu0 %v483_v25 }
 0x196   :  { %v1736_v56 = vpop.eup %1313  ;;  %v469_v16 = vmul.f32 1.442695, %v438_v42 }
 0x197   :  { %v1738_v18 = vpop.eup %1315  ;;  %v486_v20 = vsel %vm374_vm1, %v1736_v56, 0.0 }
 0x198   :  { %1325 = vpow2.f32 %v469_v16  ;;  %487 = vadd.xlane.f32.xlu1 %v486_v20  ;;  %v507_v21 = vsel %vm374_vm1, %v1738_v18, 0.0 }
 0x199   :  { %508 = vadd.xlane.f32.xlu0 %v507_v21 }
 0x19a   :  { %v1744_v9 = vpop.eup %1317 }
 0x19b   :  { %v1746_v59 = vpop.eup %1319  ;;  %v510_v12 = vsel %vm374_vm1, %v1744_v9, 0.0 }
 0x19c   :  { %511 = vadd.xlane.f32.xlu1 %v510_v12  ;;  %v489_v24 = vsel %vm374_vm1, %v1746_v59, 0.0 }
 0x19d   :  { %490 = vadd.xlane.f32.xlu0 %v489_v24 }
 0x19e   :  { %v1752_v14 = vpop.eup %1321 }
 0x19f   :  { %v1754_v8 = vpop.eup %1323  ;;  %v492_v33 = vsel %vm374_vm1, %v1752_v14, 0.0 }
 0x1a0   :  { %493 = vadd.xlane.f32.xlu1 %v492_v33  ;;  %v513_v37 = vsel %vm374_vm1, %v1754_v8, 0.0 }
 0x1a1   :  { %514 = vadd.xlane.f32.xlu0 %v513_v37 }
 0x1a2   :  { %v1762_v39 = vpop.eup %1325 }
 0x1a3   :  { %v516_v31 = vsel %vm374_vm1, %v1762_v39, 0.0 }
 0x1a4   :  { %517 = vadd.xlane.f32.xlu1 %v516_v31 }
 0x211   :  { %v473_v48 = vpop.xlane.xlu0 %472 }
 0x212   :  { %1327 = vrcp.f32 %v473_v48 }
 0x215   :  { %v476_v44 = vpop.xlane.xlu1 %475 }
 0x216   :  { %1329 = vrcp.f32 %v476_v44  ;;  %v497_v1 = vpop.xlane.xlu0 %496 }
 0x217   :  { %1331 = vrcp.f32 %v497_v1 }
 0x219   :  { %v500_v22 = vpop.xlane.xlu1 %499 }
 0x21a   :  { %1333 = vrcp.f32 %v500_v22  ;;  %v479_v47 = vpop.xlane.xlu0 %478 }
 0x21b   :  { %1335 = vrcp.f32 %v479_v47 }
 0x21c   :  { %v1328_v49 = vpop.eup %1327 }
 0x21d   :  { %v482_v50 = vpop.xlane.xlu1 %481  ;;  %v535_v0 = vmul.f32 %v1328_v49, %v1691_v40  ;;  %v1377_v40 = vmov 1  }
 0x21e   :  { %1337 = vrcp.f32 %v482_v50  ;;  %v503_v51 = vpop.xlane.xlu0 %502 }
 0x21f   :  { %1339 = vrcp.f32 %v503_v51  ;;  %553 = vperm.xlu0 %1219, %v535_v0   ;;  %1159 = vst.msk [vmem:[%s2273_s4] sm:$0xff] %vm374_vm1, %v535_v0 }
 0x220   :  { %v1330_v55 = vpop.eup %1329 }
 0x221   :  { %v1332_v57 = vpop.eup %1331  ;;  %v506_v60 = vpop.xlane.xlu1 %505  ;;  %v1772_v62 = vmul.f32 %v1330_v55, %v1697_v26 }
 0x222   :  { %1341 = vrcp.f32 %v506_v60  ;;  %v485_v2 = vpop.xlane.xlu0 %484  ;;  %v543_v5 = vmul.f32 %v1332_v57, %v1699_v29 }
 0x223   :  { %1343 = vrcp.f32 %v485_v2  ;;  %1222 = vset.pattern.permute.xlu0 %v1377_v40  ;;  %1160 = vst.msk [vmem:[%s2273_s4 + $0x8] sm:$0xff] %vm374_vm1, %v1772_v62 }
 0x224   :  { %v1334_v23 = vpop.eup %1333  ;;  %593 = vperm.xlu1 %1220, %v543_v5   ;;  %1167 = vst.msk [vmem:[%s2273_s4 + $0x40] sm:$0xff] %vm374_vm1, %v543_v5  ;;  %696 = vperm.xlu0 %1222, %v543_v5  }
 0x225   :  { %v1336_v26 = vpop.eup %1335  ;;  %v488_v29 = vpop.xlane.xlu1 %487  ;;  %v1786_v4 = vmul.f32 %v1334_v23, %v1707_v41 }
 0x226   :  { %1345 = vrcp.f32 %v488_v29  ;;  %v509_v7 = vpop.xlane.xlu0 %508  ;;  %v1789_v38 = vmul.f32 %v1336_v26, %v1709_v46 }
 0x227   :  { %1347 = vrcp.f32 %v509_v7  ;;  %1168 = vst.msk [vmem:[%s2273_s4 + $0x48] sm:$0xff] %vm374_vm1, %v1786_v4 }
 0x228   :  { %v1338_v13 = vpop.eup %1337  ;;  %1221 = vset.pattern.permute.xlu1 %v1377_v40  ;;  %1223 = vset.pattern.permute.xlu0 %v1378_v15  ;;  %1161 = vst.msk [vmem:[%s2273_s4 + $0x10] sm:$0xff] %vm374_vm1, %v1789_v38 }
 0x229   :  { %v1340_v41 = vpop.eup %1339  ;;  %664 = vperm.xlu1 %1221, %v535_v0   ;;  %v512_v46 = vpop.xlane.xlu1 %511  ;;  %824 = vperm.xlu0 %1223, %v535_v0   ;;  %v1804_v42 = vmul.f32 %v1338_v13, %v1717_v53 }
 0x22a   :  { %1349 = vrcp.f32 %v512_v46  ;;  %v491_v25 = vpop.xlane.xlu0 %490  ;;  %v1807_v16 = vmul.f32 %v1340_v41, %v1719_v58  ;;  %v1379_v58 = vmov 3  }
 0x22b   :  { %1351 = vrcp.f32 %v491_v25  ;;  %1162 = vst.msk [vmem:[%s2273_s4 + $0x18] sm:$0xff] %vm374_vm1, %v1804_v42 }
 0x22c   :  { %v1342_v20 = vpop.eup %1341  ;;  %1169 = vst.msk [vmem:[%s2273_s4 + $0x50] sm:$0xff] %vm374_vm1, %v1807_v16 }
 0x22d   :  { %v1344_v53 = vpop.eup %1343  ;;  %1224 = vset.pattern.permute.xlu1 %v1378_v15  ;;  %v494_v21 = vpop.xlane.xlu1 %493  ;;  %1225 = vset.pattern.permute.xlu0 %v1379_v58  ;;  %v1822_v12 = vmul.f32 %v1342_v20, %v1727_v6 }
 0x22e   :  { %1353 = vrcp.f32 %v494_v21  ;;  %856 = vperm.xlu1 %1224, %v543_v5   ;;  %v515_v24 = vpop.xlane.xlu0 %514  ;;  %984 = vperm.xlu0 %1225, %v535_v0   ;;  %v1825_v33 = vmul.f32 %v1344_v53, %v1729_v11 }
 0x22f   :  { %1355 = vrcp.f32 %v515_v24  ;;  %1170 = vst.msk [vmem:[%s2273_s4 + $0x58] sm:$0xff] %vm374_vm1, %v1822_v12 }
 0x230   :  { %v1346_v37 = vpop.eup %1345  ;;  %1163 = vst.msk [vmem:[%s2273_s4 + $0x20] sm:$0xff] %vm374_vm1, %v1825_v33 }
 0x231   :  { %v1348_v6 = vpop.eup %1347  ;;  %v518_v31 = vpop.xlane.xlu1 %517  ;;  %v1838_v48 = vmul.f32 %v1346_v37, %v1736_v56 }
 0x232   :  { %1357 = vrcp.f32 %v518_v31  ;;  %1226 = vset.pattern.permute.xlu1 %v1379_v58  ;;  %1228 = vset.pattern.permute.xlu0 %v1376_v35  ;;  %v1843_v11 = vmul.f32 %v1348_v6, %v1738_v18 }
 0x233   :  { %1016 = vperm.xlu1 %1226, %v543_v5   ;;  %598 = vperm.xlu0 %1228, %v1786_v4   ;;  %1164 = vst.msk [vmem:[%s2273_s4 + $0x28] sm:$0xff] %vm374_vm1, %v1838_v48 }
 0x234   :  { %v1350_v44 = vpop.eup %1349  ;;  %1171 = vst.msk [vmem:[%s2273_s4 + $0x60] sm:$0xff] %vm374_vm1, %v1843_v11 }
 0x235   :  { %v1352_v56 = vpop.eup %1351  ;;  %v1857_v18 = vmul.f32 %v1350_v44, %v1744_v9 }
 0x236   :  { %v1860_v1 = vmul.f32 %v1352_v56, %v1746_v59 }
 0x237   :  { %1227 = vset.pattern.permute.xlu1 %v1376_v35  ;;  %1229 = vset.pattern.permute.xlu0 %v1377_v40  ;;  %1172 = vst.msk [vmem:[%s2273_s4 + $0x68] sm:$0xff] %vm374_vm1, %v1857_v18 }
 0x238   :  { %v1354_v22 = vpop.eup %1353  ;;  %558 = vperm.xlu1 %1227, %v1772_v62   ;;  %668 = vperm.xlu0 %1229, %v1772_v62   ;;  %1165 = vst.msk [vmem:[%s2273_s4 + $0x30] sm:$0xff] %vm374_vm1, %v1860_v1 }
 0x239   :  { %v1356_v9 = vpop.eup %1355  ;;  %v1877_v59 = vmul.f32 %v1354_v22, %v1752_v14 }
 0x23a   :  { %v1880_v47 = vmul.f32 %v1356_v9, %v1754_v8 }
 0x23b   :  { %1166 = vst.msk [vmem:[%s2273_s4 + $0x38] sm:$0xff] %vm374_vm1, %v1877_v59 }
 0x23c   :  { %v1358_v49 = vpop.eup %1357  ;;  %1230 = vset.pattern.permute.xlu1 %v1377_v40  ;;  %1232 = vset.pattern.permute.xlu0 %v1378_v15  ;;  %1173 = vst.msk [vmem:[%s2273_s4 + $0x70] sm:$0xff] %vm374_vm1, %v1880_v47 }
 0x23d   :  { %700 = vperm.xlu1 %1230, %v1786_v4   ;;  %860 = vperm.xlu0 %1232, %v1786_v4   ;;  %v1897_v14 = vmul.f32 %v1358_v49, %v1762_v39 }
 0x23f   :  { %1174 = vst.msk [vmem:[%s2273_s4 + $0x78] sm:$0xff] %vm374_vm1, %v1897_v14  ;;  %s1380_s4 = smov 96  }
 0x241   :  { %1231 = vset.pattern.permute.xlu1 %v1378_v15  ;;  %1234 = vset.pattern.permute.xlu0 %v1379_v58 }
 0x242   :  { %828 = vperm.xlu1 %1231, %v1772_v62   ;;  %1020 = vperm.xlu0 %1234, %v1786_v4  }
 0x246   :  { %1233 = vset.pattern.permute.xlu1 %v1379_v58  ;;  %1237 = vset.pattern.permute.xlu0 %v1377_v40 }
 0x247   :  { %988 = vperm.xlu1 %1233, %v1772_v62   ;;  %704 = vperm.xlu0 %1237, %v1807_v16  }
 0x24b   :  { %1235 = vset.pattern.permute.xlu1 %v1376_v35  ;;  %1241 = vset.pattern.permute.xlu0 %v1376_v35 }
 0x24c   :  { %563 = vperm.xlu1 %1235, %v1789_v38   ;;  %608 = vperm.xlu0 %1241, %v1822_v12  }
 0x250   :  { %603 = vperm.xlu1 %1235, %v1807_v16   ;;  %1243 = vset.pattern.permute.xlu0 %v1378_v15 }
 0x251   :  { %836 = vperm.xlu0 %1243, %v1804_v42  }
 0x254   :  { %1236 = vset.pattern.permute.xlu1 %v1377_v40 }
 0x255   :  { %672 = vperm.xlu1 %1236, %v1789_v38   ;;  %868 = vperm.xlu0 %1243, %v1822_v12  }
 0x259   :  { %1238 = vset.pattern.permute.xlu1 %v1378_v15  ;;  %1244 = vset.pattern.permute.xlu0 %v1379_v58 }
 0x25a   :  { %832 = vperm.xlu1 %1238, %v1789_v38   ;;  %996 = vperm.xlu0 %1244, %v1804_v42  }
 0x25e   :  { %864 = vperm.xlu1 %1238, %v1807_v16   ;;  %1028 = vperm.xlu0 %1244, %v1822_v12  }
 0x262   :  { %1239 = vset.pattern.permute.xlu1 %v1379_v58  ;;  %1246 = vset.pattern.permute.xlu0 %v1377_v40 }
 0x263   :  { %992 = vperm.xlu1 %1239, %v1789_v38   ;;  %680 = vperm.xlu0 %1246, %v1825_v33  }
 0x267   :  { %1024 = vperm.xlu1 %1239, %v1807_v16   ;;  %712 = vperm.xlu0 %1246, %v1843_v11  }
 0x26b   :  { %1240 = vset.pattern.permute.xlu1 %v1376_v35  ;;  %1250 = vset.pattern.permute.xlu0 %v1376_v35 }
 0x26c   :  { %568 = vperm.xlu1 %1240, %v1804_v42   ;;  %618 = vperm.xlu0 %1250, %v1857_v18  }
 0x270   :  { %1242 = vset.pattern.permute.xlu1 %v1377_v40  ;;  %1252 = vset.pattern.permute.xlu0 %v1378_v15 }
 0x271   :  { %676 = vperm.xlu1 %1242, %v1804_v42   ;;  %844 = vperm.xlu0 %1252, %v1838_v48  }
 0x275   :  { %708 = vperm.xlu1 %1242, %v1822_v12   ;;  %876 = vperm.xlu0 %1252, %v1857_v18  }
 0x279   :  { %1245 = vset.pattern.permute.xlu1 %v1376_v35  ;;  %1253 = vset.pattern.permute.xlu0 %v1379_v58 }
 0x27a   :  { %573 = vperm.xlu1 %1245, %v1825_v33   ;;  %1004 = vperm.xlu0 %1253, %v1838_v48  }
 0x27e   :  { %613 = vperm.xlu1 %1245, %v1843_v11   ;;  %1036 = vperm.xlu0 %1253, %v1857_v18  }
 0x282   :  { %1247 = vset.pattern.permute.xlu1 %v1378_v15  ;;  %1255 = vset.pattern.permute.xlu0 %v1377_v40 }
 0x283   :  { %840 = vperm.xlu1 %1247, %v1825_v33   ;;  %688 = vperm.xlu0 %1255, %v1860_v1  }
 0x287   :  { %872 = vperm.xlu1 %1247, %v1843_v11   ;;  %720 = vperm.xlu0 %1255, %v1880_v47  }
 0x28b   :  { %1248 = vset.pattern.permute.xlu1 %v1379_v58  ;;  %1259 = vset.pattern.permute.xlu0 %v1376_v35 }
 0x28c   :  { %1000 = vperm.xlu1 %1248, %v1825_v33   ;;  %628 = vperm.xlu0 %1259, %v1897_v14  }
 0x290   :  { %1032 = vperm.xlu1 %1248, %v1843_v11   ;;  %1261 = vset.pattern.permute.xlu0 %v1378_v15 }
 0x291   :  { %852 = vperm.xlu0 %1261, %v1877_v59  }
 0x294   :  { %1249 = vset.pattern.permute.xlu1 %v1376_v35 }
 0x295   :  { %578 = vperm.xlu1 %1249, %v1838_v48   ;;  %884 = vperm.xlu0 %1261, %v1897_v14  }
 0x299   :  { %1251 = vset.pattern.permute.xlu1 %v1377_v40  ;;  %1262 = vset.pattern.permute.xlu0 %v1379_v58 }
 0x29a   :  { %684 = vperm.xlu1 %1251, %v1838_v48   ;;  %1012 = vperm.xlu0 %1262, %v1877_v59  }
 0x29e   :  { %716 = vperm.xlu1 %1251, %v1857_v18   ;;  %1044 = vperm.xlu0 %1262, %v1897_v14   ;;  %v1972_v8 = vpop.permute.xlu0 %553 }
 0x2a2   :  { %1254 = vset.pattern.permute.xlu1 %v1376_v35 }
 0x2a3   :  { %v1975_v39 = vpop.permute.xlu1 %593  ;;  %583 = vperm.xlu1 %1254, %v1860_v1   ;;  %v697_v50 = vpop.permute.xlu0 %696 }
 0x2a4   :  { %v735_v57 = vmul.f32 %v697_v50, %v1558_v30 }
 0x2a7   :  { %623 = vperm.xlu1 %1254, %v1880_v47  }
 0x2a8   :  { %v665_v0 = vpop.permute.xlu1 %664  ;;  %v825_v51 = vpop.permute.xlu0 %824 }
 0x2a9   :  { %v727_v55 = vmul.f32 %v665_v0, %v1555_v28  ;;  %v887_v16 = vmul.f32 %v825_v51, %v1555_v28 }
 0x2ab   :  { %1256 = vset.pattern.permute.xlu1 %v1378_v15  ;;  %759 = vrot.lane.b32.xlu0 %v727_v55, %s1380_s4 }
 0x2ac   :  { %848 = vperm.xlu1 %1256, %v1860_v1  }
 0x2ad   :  { %v857_v60 = vpop.permute.xlu1 %856  ;;  %v985_v62 = vpop.permute.xlu0 %984 }
 0x2ae   :  { %v895_v2 = vmul.f32 %v857_v60, %v1558_v30  ;;  %v1047_v29 = vmul.f32 %v985_v62, %v1555_v28 }
 0x2af   :  { %775 = vrot.lane.b32.xlu0 %v735_v57, %s1380_s4 }
 0x2b0   :  { %880 = vperm.xlu1 %1256, %v1880_v47  }
 0x2b2   :  { %v1017_v5 = vpop.permute.xlu1 %1016  ;;  %v599_v23 = vpop.permute.xlu0 %598 }
 0x2b3   :  { %v1988_v26 = vmul.f32 %v599_v23, %v1570_v45  ;;  %935 = vrot.lane.b32.xlu0 %v895_v2, %s1381_s14  ;;  %v1055_v38 = vmul.f32 %v1017_v5, %v1558_v30 }
 0x2b4   :  { %1257 = vset.pattern.permute.xlu1 %v1379_v58 }
 0x2b5   :  { %1008 = vperm.xlu1 %1257, %v1860_v1  }
 0x2b7   :  { %v1994_v4 = vpop.permute.xlu1 %558  ;;  %1079 = vrot.lane.b32.xlu0 %v1047_v29, %s1382_s15  ;;  %v669_v7 = vpop.permute.xlu0 %668 }
 0x2b8   :  { %v728_v21 = vmul.f32 %v669_v7, %v1567_v43 }
 0x2b9   :  { %1040 = vperm.xlu1 %1257, %v1880_v47  }
 0x2bb   :  { %1095 = vrot.lane.b32.xlu0 %v1055_v38, %s1382_s15 }
 0x2bc   :  { %v701_v13 = vpop.permute.xlu1 %700  ;;  %v861_v15 = vpop.permute.xlu0 %860 }
 0x2bd   :  { %1258 = vset.pattern.permute.xlu1 %v1376_v35  ;;  %v736_v12 = vmul.f32 %v701_v13, %v1570_v45  ;;  %v896_v31 = vmul.f32 %v861_v15, %v1570_v45 }
 0x2be   :  { %588 = vperm.xlu1 %1258, %v1877_v59  }
 0x2c1   :  { %v829_v41 = vpop.permute.xlu1 %828  ;;  %v1021_v46 = vpop.permute.xlu0 %1020 }
 0x2c2   :  { %1260 = vset.pattern.permute.xlu1 %v1377_v40  ;;  %v888_v37 = vmul.f32 %v829_v41, %v1567_v43  ;;  %v1056_v9 = vmul.f32 %v1021_v46, %v1570_v45 }
 0x2c3   :  { %692 = vperm.xlu1 %1260, %v1877_v59  }
 0x2c6   :  { %v989_v42 = vpop.permute.xlu1 %988  ;;  %v705_v25 = vpop.permute.xlu0 %704 }
 0x2c7   :  { %724 = vperm.xlu1 %1260, %v1897_v14   ;;  %v737_v48 = vmul.f32 %v705_v25, %v1586_v63  ;;  %v1048_v56 = vmul.f32 %v989_v42, %v1567_v43 }
 0x2cb   :  { %v2006_v20 = vpop.permute.xlu1 %563  ;;  %919 = vrot.lane.b32.xlu1 %v887_v16, %s1381_s14  ;;  %v609_v53 = vpop.permute.xlu0 %608 }
 0x2cc   :  { %v2010_v35 = vmul.f32 %v609_v53, %v1603_v19 }
 0x2cf   :  { %v2013_v58 = vpop.permute.xlu1 %603  ;;  %761 = vrot.lane.b32.xlu1 %v728_v21, %s1380_s4 }
 0x2d0   :  { %v837_v40 = vpop.permute.xlu0 %836 }
 0x2d1   :  { %v890_v15 = vmul.f32 %v837_v40, %v1600_v17 }
 0x2d3   :  { %777 = vrot.lane.b32.xlu1 %v736_v12, %s1380_s4 }
 0x2d4   :  { %v673_v24 = vpop.permute.xlu1 %672  ;;  %v869_v33 = vpop.permute.xlu0 %868 }
 0x2d5   :  { %v729_v6 = vmul.f32 %v673_v24, %v1583_v61  ;;  %v898_v25 = vmul.f32 %v869_v33, %v1603_v19 }
 0x2d7   :  { %921 = vrot.lane.b32.xlu1 %v888_v37, %s1381_s14  ;;  %763 = vrot.lane.b32.xlu0 %v729_v6, %s1380_s4 }
 0x2d9   :  { %v833_v11 = vpop.permute.xlu1 %832  ;;  %v997_v44 = vpop.permute.xlu0 %996 }
 0x2da   :  { %v889_v18 = vmul.f32 %v833_v11, %v1583_v61  ;;  %v1050_v12 = vmul.f32 %v997_v44, %v1600_v17 }
 0x2db   :  { %937 = vrot.lane.b32.xlu1 %v896_v31, %s1381_s14  ;;  %779 = vrot.lane.b32.xlu0 %v737_v48, %s1380_s4 }
 0x2dd   :  { %v865_v1 = vpop.permute.xlu1 %864  ;;  %v1029_v22 = vpop.permute.xlu0 %1028 }
 0x2de   :  { %v897_v59 = vmul.f32 %v865_v1, %v1586_v63  ;;  %v1058_v6 = vmul.f32 %v1029_v22, %v1603_v19 }
 0x2df   :  { %1081 = vrot.lane.b32.xlu1 %v1048_v56, %s1382_s15  ;;  %923 = vrot.lane.b32.xlu0 %v889_v18, %s1381_s14 }
 0x2e2   :  { %v993_v47 = vpop.permute.xlu1 %992  ;;  %v681_v49 = vpop.permute.xlu0 %680 }
 0x2e3   :  { %1097 = vrot.lane.b32.xlu1 %v1056_v9, %s1382_s15  ;;  %939 = vrot.lane.b32.xlu0 %v897_v59, %s1381_s14  ;;  %v1049_v14 = vmul.f32 %v993_v47, %v1583_v61  ;;  %v731_v62 = vmul.f32 %v681_v49, %v1617_v34 }
 0x2e6   :  { %v1025_v50 = vpop.permute.xlu1 %1024  ;;  %v713_v0 = vpop.permute.xlu0 %712 }
 0x2e7   :  { %1083 = vrot.lane.b32.xlu0 %v1049_v14, %s1382_s15  ;;  %v1057_v51 = vmul.f32 %v1025_v50, %v1586_v63  ;;  %v739_v23 = vmul.f32 %v713_v0, %v1620_v36 }
 0x2eb   :  { %v569_v55 = vpop.permute.xlu1 %568  ;;  %1099 = vrot.lane.b32.xlu0 %v1057_v51, %s1382_s15  ;;  %v619_v45 = vpop.permute.xlu0 %618 }
 0x2ec   :  { %v2039_v57 = vmul.f32 %v569_v55, %v1600_v17  ;;  %v2042_v60 = vmul.f32 %v619_v45, %v1636_v54 }
 0x2ef   :  { %767 = vrot.lane.b32.xlu0 %v731_v62, %s1380_s4 }
 0x2f0   :  { %v677_v2 = vpop.permute.xlu1 %676  ;;  %v845_v5 = vpop.permute.xlu0 %844 }
 0x2f1   :  { %v730_v29 = vmul.f32 %v677_v2, %v1600_v17  ;;  %v892_v45 = vmul.f32 %v845_v5, %v1633_v52 }
 0x2f3   :  { %765 = vrot.lane.b32.xlu1 %v730_v29, %s1380_s4  ;;  %783 = vrot.lane.b32.xlu0 %v739_v23, %s1380_s4 }
 0x2f4   :  { %v709_v7 = vpop.permute.xlu1 %708  ;;  %v877_v38 = vpop.permute.xlu0 %876 }
 0x2f5   :  { %v738_v13 = vmul.f32 %v709_v7, %v1603_v19  ;;  %v900_v29 = vmul.f32 %v877_v38, %v1636_v54 }
 0x2f7   :  { %781 = vrot.lane.b32.xlu1 %v738_v13, %s1380_s4 }
 0x2f9   :  { %v574_v41 = vpop.permute.xlu1 %573  ;;  %v1005_v46 = vpop.permute.xlu0 %1004 }
 0x2fa   :  { %v2054_v42 = vmul.f32 %v574_v41, %v1617_v34  ;;  %v1052_v5 = vmul.f32 %v1005_v46, %v1633_v52 }
 0x2fb   :  { %925 = vrot.lane.b32.xlu1 %v890_v15, %s1381_s14  ;;  %v639_v15 = vmul.f32 %v1975_v39, %v1558_v30 }
 0x2fd   :  { %v614_v16 = vpop.permute.xlu1 %613  ;;  %v1037_v53 = vpop.permute.xlu0 %1036 }
 0x2fe   :  { %v2059_v21 = vmul.f32 %v614_v16, %v1620_v36  ;;  %v1359_v16 = vld [vmem:[%s2271_s0 + $0x40] sm:$0xff] }
 0x2ff   :  { %941 = vrot.lane.b32.xlu1 %v898_v25, %s1381_s14 }
 0x302   :  { %v841_v24 = vpop.permute.xlu1 %840  ;;  %v689_v40 = vpop.permute.xlu0 %688 }
 0x303   :  { %v891_v37 = vmul.f32 %v841_v24, %v1617_v34  ;;  %1085 = vrot.lane.b32.xlu1 %v1050_v12, %s1382_s15  ;;  %v733_v22 = vmul.f32 %v689_v40, %v1649_v3  ;;  %v655_v12 = vadd.f32 %v1359_v16, %v639_v15  ;;  %v1060_v40 = vmul.f32 %v1037_v53, %v1636_v54 }
 0x304   :  { %v632_v15 = vmul.f32 %v1994_v4, %v1567_v43 }
 0x305   :  { %927 = vrot.lane.b32.xlu0 %v891_v37, %s1381_s14 }
 0x306   :  { %v873_v33 = vpop.permute.xlu1 %872  ;;  %v721_v31 = vpop.permute.xlu0 %720 }
 0x307   :  { %v899_v48 = vmul.f32 %v873_v33, %v1620_v36  ;;  %1101 = vrot.lane.b32.xlu1 %v1058_v6, %s1382_s15 }
 0x309   :  { %943 = vrot.lane.b32.xlu0 %v899_v48, %s1381_s14 }
 0x30b   :  { %v1001_v11 = vpop.permute.xlu1 %1000  ;;  %v629_v17 = vpop.permute.xlu0 %628 }
 0x30c   :  { %v1051_v44 = vmul.f32 %v1001_v11, %v1617_v34  ;;  %v2072_v56 = vmul.f32 %v629_v17, %v1668_v32  ;;  %v741_v34 = vmul.f32 %v721_v31, %v1652_v10 }
 0x30e   :  { %1087 = vrot.lane.b32.xlu0 %v1051_v44, %s1382_s15  ;;  %v631_v44 = vmul.f32 %v1972_v8, %v1555_v28 }
 0x30f   :  { %v1033_v19 = vpop.permute.xlu1 %1032 }
 0x310   :  { %v1059_v18 = vmul.f32 %v1033_v19, %v1620_v36  ;;  %v2076_v1 = vpop.permute.xlu0 %852 }
 0x311   :  { %v894_v28 = vmul.f32 %v2076_v1, %v1665_v27 }
 0x312   :  { %1103 = vrot.lane.b32.xlu0 %v1059_v18, %s1382_s15  ;;  %v1360_v18 = vld [vmem:[%s2271_s0] sm:$0xff] }
 0x314   :  { %v579_v9 = vpop.permute.xlu1 %578  ;;  %v2080_v59 = vpop.permute.xlu0 %884 }
 0x315   :  { %v2083_v47 = vmul.f32 %v579_v9, %v1633_v52 }
 0x316   :  { %771 = vrot.lane.b32.xlu0 %v733_v22, %s1380_s4 }
 0x319   :  { %v685_v49 = vpop.permute.xlu1 %684  ;;  %v2087_v14 = vpop.permute.xlu0 %1012 }
 0x31a   :  { %v732_v36 = vmul.f32 %v685_v49, %v1633_v52  ;;  %787 = vrot.lane.b32.xlu0 %v741_v34, %s1380_s4 }
 0x31c   :  { %769 = vrot.lane.b32.xlu1 %v732_v36, %s1380_s4 }
 0x31d   :  { %v717_v50 = vpop.permute.xlu1 %716  ;;  %v2092_v0 = vpop.permute.xlu0 %1044 }
 0x31e   :  { %v740_v51 = vmul.f32 %v717_v50, %v1636_v54 }
 0x320   :  { %785 = vrot.lane.b32.xlu1 %v740_v51, %s1380_s4 }
 0x321   :  { %v760_v55 = vpop.permute.xlu0 %759 }
 0x322   :  { %v584_v62 = vpop.permute.xlu1 %583 }
 0x323   :  { %v2098_v2 = vmul.f32 %v584_v62, %v1649_v3 }
 0x324   :  { %929 = vrot.lane.b32.xlu1 %v892_v45, %s1381_s14  ;;  %v902_v45 = vmul.f32 %v2080_v59, %v1668_v32  ;;  %v1361_v59 = vld [vmem:[%s2271_s0 + $0x10] sm:$0xff] }
 0x325   :  { %v776_v23 = vpop.permute.xlu0 %775 }
 0x326   :  { %v624_v7 = vpop.permute.xlu1 %623  ;;  %v815_v37 = vadd.f32 %v776_v23, %v655_v12  ;;  %v1054_v23 = vmul.f32 %v2087_v14, %v1665_v27  ;;  %v1363_v14 = vld [vmem:[%s2271_s0 + $0x8] sm:$0xff] }
 0x327   :  { %v2103_v13 = vmul.f32 %v624_v7, %v1652_v10 }
 0x328   :  { %945 = vrot.lane.b32.xlu1 %v900_v29, %s1381_s14  ;;  %v641_v29 = vmul.f32 %v2013_v58, %v1586_v63  ;;  %v1362_v63 = vld [vmem:[%s2271_s0 + $0x50] sm:$0xff] }
 0x329   :  { %v936_v41 = vpop.permute.xlu0 %935 }
 0x32a   :  { %v975_v39 = vadd.f32 %v936_v41, %v815_v37 }
 0x32b   :  { %v849_v25 = vpop.permute.xlu1 %848 }
 0x32c   :  { %v893_v38 = vmul.f32 %v849_v25, %v1649_v3  ;;  %1089 = vrot.lane.b32.xlu1 %v1052_v5, %s1382_s15  ;;  %v1062_v5 = vmul.f32 %v2092_v0, %v1668_v32  ;;  %v648_v25 = vadd.f32 %v1363_v14, %v632_v15 }
 0x32d   :  { %v1080_v24 = vpop.permute.xlu0 %1079 }
 0x32e   :  { %931 = vrot.lane.b32.xlu0 %v893_v38, %s1381_s14 }
 0x32f   :  { %v881_v30 = vpop.permute.xlu1 %880 }
 0x330   :  { %v901_v52 = vmul.f32 %v881_v30, %v1652_v10  ;;  %1105 = vrot.lane.b32.xlu1 %v1060_v40, %s1382_s15 }
 0x331   :  { %v1096_v46 = vpop.permute.xlu0 %1095 }
 0x332   :  { %947 = vrot.lane.b32.xlu0 %v901_v52, %s1381_s14  ;;  %v1135_v6 = vadd.f32 %v1096_v46, %v975_v39 }
 0x334   :  { %1151 = vst.msk [vmem:[%s2274_s3 + $0x40] sm:$0xff] %vm52_vm0, %v1135_v6  ;;  %v1009_v33 = vpop.permute.xlu1 %1008 }
 0x335   :  { %v1053_v54 = vmul.f32 %v1009_v33, %v1649_v3 }
 0x337   :  { %1091 = vrot.lane.b32.xlu0 %v1053_v54, %s1382_s15 }
 0x338   :  { %v1041_v53 = vpop.permute.xlu1 %1040 }
 0x339   :  { %v1061_v31 = vmul.f32 %v1041_v53, %v1652_v10  ;;  %v647_v10 = vadd.f32 %v1360_v18, %v631_v44 }
 0x33b   :  { %1107 = vrot.lane.b32.xlu0 %v1061_v31, %s1382_s15  ;;  %v807_v9 = vadd.f32 %v760_v55, %v647_v10  ;;  %v633_v55 = vmul.f32 %v2006_v20, %v1583_v61  ;;  %v1366_v10 = vld [vmem:[%s2271_s0 + $0x58] sm:$0xff] }
 0x33d   :  { %v589_v48 = vpop.permute.xlu1 %588  ;;  %v649_v7 = vadd.f32 %v1361_v59, %v633_v55 }
 0x33e   :  { %v2128_v11 = vmul.f32 %v589_v48, %v1665_v27 }
 0x342   :  { %v693_v17 = vpop.permute.xlu1 %692 }
 0x343   :  { %v734_v19 = vmul.f32 %v693_v17, %v1665_v27  ;;  %v657_v27 = vadd.f32 %v1362_v63, %v641_v29  ;;  %v1365_v17 = vld [vmem:[%s2271_s0 + $0x18] sm:$0xff]  ;;  %v1369_v63 = vld [vmem:[%s2271_s0 + $0x28] sm:$0xff] }
 0x344   :  { %v650_v44 = vadd.f32 %v1365_v17, %v2039_v57 }
 0x345   :  { %773 = vrot.lane.b32.xlu1 %v734_v19, %s1380_s4 }
 0x346   :  { %v725_v3 = vpop.permute.xlu1 %724 }
 0x347   :  { %v742_v22 = vmul.f32 %v725_v3, %v1668_v32  ;;  %v1364_v32 = vld [vmem:[%s2271_s0 + $0x48] sm:$0xff] }
 0x348   :  { %v656_v0 = vadd.f32 %v1364_v32, %v1988_v26 }
 0x349   :  { %789 = vrot.lane.b32.xlu1 %v742_v22, %s1380_s4  ;;  %v764_v34 = vpop.permute.xlu0 %763  ;;  %v658_v22 = vadd.f32 %v1366_v10, %v2010_v35  ;;  %v1374_v10 = vld [vmem:[%s2271_s0 + $0x78] sm:$0xff] }
 0x34a   :  { %v920_v49 = vpop.permute.xlu1 %919  ;;  %v809_v20 = vadd.f32 %v764_v34, %v649_v7 }
 0x34b   :  { %v967_v8 = vadd.f32 %v920_v49, %v807_v9 }
 0x34d   :  { %v1127_v36 = vadd.f32 %v1080_v24, %v967_v8  ;;  %933 = vrot.lane.b32.xlu1 %v894_v28, %s1381_s14  ;;  %v780_v50 = vpop.permute.xlu0 %779 }
 0x34e   :  { %v762_v51 = vpop.permute.xlu1 %761  ;;  %v817_v4 = vadd.f32 %v780_v50, %v657_v27  ;;  %v1367_v50 = vld [vmem:[%s2271_s0 + $0x20] sm:$0xff]  ;;  %v652_v27 = vadd.f32 %v1369_v63, %v2083_v47 }
 0x34f   :  { %1143 = vst.msk [vmem:[%s2274_s3] sm:$0xff] %vm52_vm0, %v1127_v36  ;;  %v808_v38 = vadd.f32 %v762_v51, %v648_v25  ;;  %v651_v51 = vadd.f32 %v1367_v50, %v2054_v42 }
 0x351   :  { %949 = vrot.lane.b32.xlu1 %v902_v45, %s1381_s14  ;;  %v924_v1 = vpop.permute.xlu0 %923 }
 0x352   :  { %v778_v62 = vpop.permute.xlu1 %777  ;;  %v969_v58 = vadd.f32 %v924_v1, %v809_v20  ;;  %v1368_v1 = vld [vmem:[%s2271_s0 + $0x60] sm:$0xff] }
 0x353   :  { %v816_v52 = vadd.f32 %v778_v62, %v656_v0  ;;  %v659_v62 = vadd.f32 %v1368_v1, %v2059_v21 }
 0x355   :  { %1093 = vrot.lane.b32.xlu1 %v1054_v23, %s1382_s15  ;;  %v940_v61 = vpop.permute.xlu0 %939 }
 0x356   :  { %v922_v41 = vpop.permute.xlu1 %921  ;;  %v977_v24 = vadd.f32 %v940_v61, %v817_v4 }
 0x357   :  { %v968_v40 = vadd.f32 %v922_v41, %v808_v38 }
 0x359   :  { %1109 = vrot.lane.b32.xlu1 %v1062_v5, %s1382_s15  ;;  %v1084_v43 = vpop.permute.xlu0 %1083 }
 0x35a   :  { %v1129_v16 = vadd.f32 %v1084_v43, %v969_v58  ;;  %v938_v12 = vpop.permute.xlu1 %937  ;;  %v1370_v43 = vld [vmem:[%s2271_s0 + $0x68] sm:$0xff] }
 0x35b   :  { %v976_v6 = vadd.f32 %v938_v12, %v816_v52  ;;  %v660_v4 = vadd.f32 %v1370_v43, %v2042_v60  ;;  %v1372_v52 = vld [vmem:[%s2271_s0 + $0x70] sm:$0xff] }
 0x35c   :  { %1145 = vst.msk [vmem:[%s2274_s3 + $0x10] sm:$0xff] %vm52_vm0, %v1129_v16 }
 0x35d   :  { %v1100_v37 = vpop.permute.xlu0 %1099 }
 0x35e   :  { %v1137_v30 = vadd.f32 %v1100_v37, %v977_v24  ;;  %v1082_v39 = vpop.permute.xlu1 %1081  ;;  %v1371_v37 = vld [vmem:[%s2271_s0 + $0x30] sm:$0xff] }
 0x35f   :  { %v1128_v46 = vadd.f32 %v1082_v39, %v968_v40 }
 0x360   :  { %1153 = vst.msk [vmem:[%s2274_s3 + $0x50] sm:$0xff] %vm52_vm0, %v1137_v30  ;;  %v653_v30 = vadd.f32 %v1371_v37, %v2098_v2 }
 0x361   :  { %1144 = vst.msk [vmem:[%s2274_s3 + $0x8] sm:$0xff] %vm52_vm0, %v1128_v46  ;;  %v768_v31 = vpop.permute.xlu0 %767  ;;  %v661_v46 = vadd.f32 %v1372_v52, %v2103_v13 }
 0x362   :  { %v1098_v33 = vpop.permute.xlu1 %1097  ;;  %v811_v55 = vadd.f32 %v768_v31, %v651_v51 }
 0x363   :  { %v1136_v54 = vadd.f32 %v1098_v33, %v976_v6 }
 0x365   :  { %1152 = vst.msk [vmem:[%s2274_s3 + $0x48] sm:$0xff] %vm52_vm0, %v1136_v54  ;;  %v784_v3 = vpop.permute.xlu0 %783 }
 0x366   :  { %v766_v26 = vpop.permute.xlu1 %765  ;;  %v819_v59 = vadd.f32 %v784_v3, %v659_v62 }
 0x367   :  { %v810_v18 = vadd.f32 %v766_v26, %v650_v44  ;;  %v1373_v44 = vld [vmem:[%s2271_s0 + $0x38] sm:$0xff] }
 0x36a   :  { %v782_v53 = vpop.permute.xlu1 %781 }
 0x36b   :  { %v818_v49 = vadd.f32 %v782_v53, %v658_v22  ;;  %v662_v22 = vadd.f32 %v1374_v10, %v2072_v56 }
 0x36e   :  { %v926_v48 = vpop.permute.xlu1 %925 }
 0x36f   :  { %v970_v9 = vadd.f32 %v926_v48, %v810_v18 }
 0x372   :  { %v942_v19 = vpop.permute.xlu1 %941 }
 0x373   :  { %v978_v36 = vadd.f32 %v942_v19, %v818_v49  ;;  %v654_v19 = vadd.f32 %v1373_v44, %v2128_v11 }
 0x376   :  { %v1086_v34 = vpop.permute.xlu1 %1085 }
 0x377   :  { %v1130_v28 = vadd.f32 %v1086_v34, %v970_v9  ;;  %v928_v8 = vpop.permute.xlu0 %927 }
 0x378   :  { %v971_v23 = vadd.f32 %v928_v8, %v811_v55 }
 0x379   :  { %1146 = vst.msk [vmem:[%s2274_s3 + $0x18] sm:$0xff] %vm52_vm0, %v1130_v28 }
 0x37a   :  { %v1102_v57 = vpop.permute.xlu1 %1101 }
 0x37b   :  { %v1138_v45 = vadd.f32 %v1102_v57, %v978_v36  ;;  %v944_v35 = vpop.permute.xlu0 %943 }
 0x37c   :  { %v979_v15 = vadd.f32 %v944_v35, %v819_v59 }
 0x37d   :  { %1154 = vst.msk [vmem:[%s2274_s3 + $0x58] sm:$0xff] %vm52_vm0, %v1138_v45 }
 0x380   :  { %v1088_v29 = vpop.permute.xlu0 %1087 }
 0x381   :  { %v1131_v7 = vadd.f32 %v1088_v29, %v971_v23 }
 0x383   :  { %1147 = vst.msk [vmem:[%s2274_s3 + $0x20] sm:$0xff] %vm52_vm0, %v1131_v7 }
 0x384   :  { %v1104_v42 = vpop.permute.xlu0 %1103 }
 0x385   :  { %v1139_v61 = vadd.f32 %v1104_v42, %v979_v15 }
 0x387   :  { %1155 = vst.msk [vmem:[%s2274_s3 + $0x60] sm:$0xff] %vm52_vm0, %v1139_v61 }
 0x388   :  { %v772_v21 = vpop.permute.xlu0 %771 }
 0x389   :  { %v813_v39 = vadd.f32 %v772_v21, %v653_v30 }
 0x38c   :  { %v788_v25 = vpop.permute.xlu0 %787 }
 0x38d   :  { %v821_v54 = vadd.f32 %v788_v25, %v661_v46 }
 0x38e   :  { %v770_v20 = vpop.permute.xlu1 %769 }
 0x38f   :  { %v812_v14 = vadd.f32 %v770_v20, %v652_v27 }
 0x392   :  { %v786_v41 = vpop.permute.xlu1 %785 }
 0x393   :  { %v820_v38 = vadd.f32 %v786_v41, %v660_v4 }
 0x396   :  { %v930_v5 = vpop.permute.xlu1 %929 }
 0x397   :  { %v972_v16 = vadd.f32 %v930_v5, %v812_v14 }
 0x39a   :  { %v946_v58 = vpop.permute.xlu1 %945 }
 0x39b   :  { %v980_v0 = vadd.f32 %v946_v58, %v820_v38 }
 0x39e   :  { %v1090_v12 = vpop.permute.xlu1 %1089 }
 0x39f   :  { %v1132_v24 = vadd.f32 %v1090_v12, %v972_v16 }
 0x3a0   :  { %v932_v32 = vpop.permute.xlu0 %931 }
 0x3a1   :  { %1148 = vst.msk [vmem:[%s2274_s3 + $0x28] sm:$0xff] %vm52_vm0, %v1132_v24  ;;  %v973_v6 = vadd.f32 %v932_v32, %v813_v39 }
 0x3a2   :  { %v1106_v47 = vpop.permute.xlu1 %1105 }
 0x3a3   :  { %v1140_v40 = vadd.f32 %v1106_v47, %v980_v0 }
 0x3a4   :  { %v948_v60 = vpop.permute.xlu0 %947 }
 0x3a5   :  { %1156 = vst.msk [vmem:[%s2274_s3 + $0x68] sm:$0xff] %vm52_vm0, %v1140_v40  ;;  %v981_v53 = vadd.f32 %v948_v60, %v821_v54 }
 0x3a9   :  { %v1092_v33 = vpop.permute.xlu0 %1091 }
 0x3aa   :  { %v1133_v26 = vadd.f32 %v1092_v33, %v973_v6 }
 0x3ac   :  { %1149 = vst.msk [vmem:[%s2274_s3 + $0x30] sm:$0xff] %vm52_vm0, %v1133_v26 }
 0x3ad   :  { %v1108_v2 = vpop.permute.xlu0 %1107 }
 0x3ae   :  { %v1141_v31 = vadd.f32 %v1108_v2, %v981_v53 }
 0x3b0   :  { %1157 = vst.msk [vmem:[%s2274_s3 + $0x70] sm:$0xff] %vm52_vm0, %v1141_v31 }
 0x3b7   :  { %v774_v48 = vpop.permute.xlu1 %773 }
 0x3b8   :  { %v814_v18 = vadd.f32 %v774_v48, %v654_v19 }
 0x3bb   :  { %v790_v17 = vpop.permute.xlu1 %789 }
 0x3bc   :  { %v822_v49 = vadd.f32 %v790_v17, %v662_v22 }
 0x3bf   :  { %v934_v13 = vpop.permute.xlu1 %933 }
 0x3c0   :  { %v974_v9 = vadd.f32 %v934_v13, %v814_v18 }
 0x3c3   :  { %v950_v3 = vpop.permute.xlu1 %949 }
 0x3c4   :  { %v982_v8 = vadd.f32 %v950_v3, %v822_v49 }
 0x3c7   :  { %v1094_v34 = vpop.permute.xlu1 %1093 }
 0x3c8   :  { %v1134_v28 = vadd.f32 %v1094_v34, %v974_v9 }
 0x3ca   :  { %1150 = vst.msk [vmem:[%s2274_s3 + $0x38] sm:$0xff] %vm52_vm0, %v1134_v28 }
 0x3cb   :  { %v1110_v36 = vpop.permute.xlu1 %1109 }
 0x3cc   :  { %v1142_v11 = vadd.f32 %v1110_v36, %v982_v8 }
 0x3ce   :  { %1158 = vst.msk [vmem:[%s2274_s3 + $0x78] sm:$0xff] %vm52_vm0, %v1142_v11 }

</bundles_post_ra>
